<compile_context>
chip_gen: v7x
topology: tpu7x:2x2x1
jax: 0.10.0
libtpu: 0.0.40
codegen_flags: <defaults>
</compile_context>

<pallas_src>
import functools
import math

import jax
import jax.numpy as jnp
from jax.experimental import pallas as pl
from jax.experimental.pallas import tpu as pltpu


# ------------------------------- kernel body --------------------------------


def mlp_kernel(x_ref, w1t_ref, b1_ref, w2_ref, b2_ref, o_ref, acc_ref, *, acc_w):
    """One (batch-tile i, fc1-column-tile j) step of the fused MLP.

    x_ref  : (tb, H_in)   mxu dtype (bf16 or f32)
    w1t_ref: (H_in, tn)   mxu dtype  -- fc1 weight, pre-transposed to (K, N)
    b1_ref : (1, tn)      f32
    w2_ref : (1, tn)      f32        -- fc2 weight row
    b2_ref : (1,)         f32, SMEM  -- fc2 bias scalar
    o_ref  : (tb, 1)      f32
    acc_ref: (tb, acc_w)  f32 VMEM   -- lane-dense fc2 partial sums
    """
    j = pl.program_id(1)

    @pl.when(j == 0)
    def _():
        acc_ref[...] = jnp.zeros_like(acc_ref)

    # fc1 tile on the MXU (bf16 feed, f32 accumulate); bias + ReLU on the f32 VPU.
    h = jnp.dot(x_ref[...], w1t_ref[...], preferred_element_type=jnp.float32)
    h = jnp.maximum(h + b1_ref[...], 0.0)                       # (tb, tn) f32

    # fc2 partial sums, kept lane-dense: fold the tn lanes into acc_w-wide
    # lane-aligned slices with full-width VPU adds.  No per-step cross-lane
    # (XLU) reduce and no masked 1-lane accumulator stores.
    pw = h * w2_ref[...]                                        # (tb, tn) f32
    tn = pw.shape[-1]
    partial = pw[:, :acc_w]
    for g in range(1, tn // acc_w):                             # static unroll
        partial = partial + pw[:, g * acc_w:(g + 1) * acc_w]
    acc_ref[...] += partial

    # Single cross-lane reduction + scalar bias, once per batch tile.
    @pl.when(j == pl.num_programs(1) - 1)
    def _():
        o_ref[...] = (jnp.sum(acc_ref[...], axis=-1, keepdims=True)
                      + b2_ref[0]).astype(o_ref.dtype)


# ------------------------------ tiling helpers -------------------------------


def _round_up(x, m):
    return ((x + m - 1) // m) * m


def _cdiv(a, b):
    return (a + b - 1) // b


def _vmem_capacity_bytes():
    """Physical VMEM of the attached TPU; conservative (v7x) fallback if unknown."""
    try:
        cap = getattr(pltpu.get_tpu_info(), "vmem_capacity_bytes", None)
        if cap:
            return int(cap)
    except Exception:
        pass
    return 64 << 20


def _choose_tiles(B, H_out, H_in, mxu_bytes):
    """Derive (tb, tn, w1_resident) from the per-generation VMEM budget."""
    vmem = _vmem_capacity_bytes()
    budget = vmem // 3                      # tiles + intermediates; compiler headroom

    w1_bytes = H_out * H_in * mxu_bytes
    w1_resident = w1_bytes <= budget // 2   # keep W1 in VMEM, DMA'd exactly once
    if w1_resident:
        tn = H_out
        w1_cost = w1_bytes
    else:
        # Streamed, double-buffered (H_in, tn) column tiles; multiple of 256 to
        # match the v6e/v7x MXU (also a clean multiple of v5e's 128-wide MXU).
        tn = ((budget // 2) // (2 * H_in * mxu_bytes)) // 256 * 256
        tn = max(256, min(2048, tn))
        tn = min(tn, _round_up(H_out, 256))
        w1_cost = 2 * tn * H_in * mxu_bytes

    # Spend the rest on double-buffered (tb, H_in) x tiles, the (tb, tn) f32
    # hidden intermediate, and the (tb, 128) accumulator.
    per_row = 2 * H_in * mxu_bytes + tn * 4 + 128 * 4
    tb = (max(budget - w1_cost, 0) // per_row) // 8 * 8
    tb = max(8, min(1024, tb))
    return tb, tn, w1_resident


# --------------------------------- wrapper -----------------------------------


def mlp_forward(x, w1, b1, w2, b2, *, mxu_dtype=jnp.bfloat16):
    """Fused MLP forward: x:(B,H_in) -> (B,1).

    w1:(H_out,H_in), b1:(H_out,) or (1,H_out), w2:(1,H_out), b2:(1,)
    (PyTorch nn.Linear storage layout).
    """
    B, H_in = x.shape
    H_out = w1.shape[0]
    b1 = jnp.asarray(b1, jnp.float32).reshape(1, H_out)
    w2 = jnp.asarray(w2, jnp.float32).reshape(1, H_out)
    b2 = jnp.asarray(b2, jnp.float32).reshape(1)

    mxu_bytes = jnp.zeros((), mxu_dtype).dtype.itemsize
    tb, tn, w1_resident = _choose_tiles(B, H_out, H_in, mxu_bytes)

    # Batch tile: bounded by the (padded) batch; keep >= 2 tiles on big batches
    # so the "parallel" axis can shard across v7x's two TensorCores.
    tb = min(tb, _round_up(B, 8))
    if B >= 16 and _cdiv(B, tb) < 2:
        tb = _round_up(_cdiv(B, 2), 8)
    B_pad = _round_up(B, tb)
    H_out_pad = H_out if w1_resident else _round_up(H_out, tn)

    # Zero-pad up to the tile grid (exact for this MLP: padded batch rows are
    # sliced off and padded fc1 neurons contribute ReLU(0) * 0 = 0 to fc2).
    xp = jnp.pad(x, ((0, B_pad - B), (0, 0))) if B_pad != B else x
    if H_out_pad != H_out:
        w1 = jnp.pad(w1, ((0, H_out_pad - H_out), (0, 0)))
        b1 = jnp.pad(b1, ((0, 0), (0, H_out_pad - H_out)))
        w2 = jnp.pad(w2, ((0, 0), (0, H_out_pad - H_out)))

    # bf16 MXU feed (halves the W1 HBM stream); W1 pre-transposed once in the
    # wrapper to the standard (K, N) layout -> no in-kernel weight relayout.
    xp = xp.astype(mxu_dtype)
    w1t = jnp.asarray(w1, jnp.float32).T.astype(mxu_dtype)      # (H_in, H_out_pad)

    acc_w = 128 if tn % 128 == 0 else tn
    grid = (B_pad // tb, H_out_pad // tn)
    # TODO(synk): if both B and H_out are huge (W1 streamed once per batch tile),
    # swap the grid nest (columns outer / batch inner) so W1 streams exactly once.

    out = pl.pallas_call(
        functools.partial(mlp_kernel, acc_w=acc_w),
        out_shape=jax.ShapeDtypeStruct((B_pad, 1), jnp.float32),
        grid_spec=pltpu.PrefetchScalarGridSpec(
            num_scalar_prefetch=0,
            grid=grid,
            in_specs=[
                pl.BlockSpec((tb, H_in), lambda i, j: (i, 0)),       # x batch tile
                pl.BlockSpec((H_in, tn), lambda i, j: (0, j)),       # W1^T column tile
                pl.BlockSpec((1, tn), lambda i, j: (0, j)),          # b1 slice
                pl.BlockSpec((1, tn), lambda i, j: (0, j)),          # w2 slice
                pl.BlockSpec(memory_space=pltpu.MemorySpace.SMEM),   # b2 scalar
            ],
            out_specs=pl.BlockSpec((tb, 1), lambda i, j: (i, 0)),
            scratch_shapes=[pltpu.VMEM((tb, acc_w), jnp.float32)],
        ),
        compiler_params=pltpu.CompilerParams(
            dimension_semantics=("parallel", "arbitrary"),
            vmem_limit_bytes=int(_vmem_capacity_bytes() * 3 // 4),
        ),
    )(xp, w1t, b1, w2, b2)

    return out[:B].astype(x.dtype)


# --------------------------------- demo / test --------------------------------


def init_params(key, hidden_size):
    """PyTorch nn.Linear default init: U(-1/sqrt(fan_in), 1/sqrt(fan_in))."""
    k1, k2, k3, k4 = jax.random.split(key, 4)
    bound = 1.0 / math.sqrt(hidden_size)
    w1 = jax.random.uniform(k1, (hidden_size, hidden_size), jnp.float32,
                            minval=-bound, maxval=bound)
    b1 = jax.random.uniform(k2, (hidden_size,), jnp.float32,
                            minval=-bound, maxval=bound)
    w2 = jax.random.uniform(k3, (1, hidden_size), jnp.float32,
                            minval=-bound, maxval=bound)
    b2 = jax.random.uniform(k4, (1,), jnp.float32,
                            minval=-bound, maxval=bound)
    return w1, b1, w2, b2


if __name__ == "__main__":
    hidden_size = 32
    batch = 8

    key = jax.random.PRNGKey(0)
    kx, kp = jax.random.split(key)
    x = jax.random.normal(kx, (batch, hidden_size), jnp.float32)
    w1, b1, w2, b2 = init_params(kp, hidden_size)

    # Plain-JAX reference with the same semantics as the PyTorch module.
    ref = jnp.maximum(x @ w1.T + b1, 0.0) @ w2.T + b2

    # f32 validation path: strict tolerance against the reference.
    out_f32 = mlp_forward(x, w1, b1, w2, b2, mxu_dtype=jnp.float32)
    jax.block_until_ready(out_f32)
    assert out_f32.shape == (batch, 1)
    assert jnp.allclose(out_f32, ref, atol=1e-5, rtol=1e-5)

    # bf16 MXU-fed performance path: f32 accumulation, looser tolerance.
    out_bf16 = mlp_forward(x, w1, b1, w2, b2, mxu_dtype=jnp.bfloat16)
    jax.block_until_ready(out_bf16)
    assert out_bf16.shape == (batch, 1)
    assert jnp.allclose(out_bf16, ref, atol=3e-2, rtol=3e-2)

    print("KERNEL_OK")
</pallas_src>

<mosaic_0001>
module attributes {stable_mosaic.version = 11 : i64} {
  func.func @mlp_kernel(%arg0: i32, %arg1: i32, %arg2: memref<8x32xf32, #tpu.memory_space<vmem>>, %arg3: memref<32x32xf32, #tpu.memory_space<vmem>>, %arg4: memref<1x32xf32, #tpu.memory_space<vmem>>, %arg5: memref<1x32xf32, #tpu.memory_space<vmem>>, %arg6: memref<1xf32, #tpu.memory_space<smem>>, %arg7: memref<8x1xf32, #tpu.memory_space<vmem>>, %arg8: memref<8x32xf32, #tpu.memory_space<vmem>>) attributes {dimension_semantics = [#tpu.dimension_semantics<parallel>, #tpu.dimension_semantics<arbitrary>], iteration_bounds = array<i64: 1, 1>, scalar_prefetch = 0 : i64, scratch_operands = 1 : i64, tpu.core_type = #tpu.core_type<tc>, window_params = [{transform_indices = @transform_0, window_bounds = array<i64: 8, 32>}, {transform_indices = @transform_1, window_bounds = array<i64: 32, 32>}, {transform_indices = @transform_2, window_bounds = array<i64: 1, 32>}, {transform_indices = @transform_3, window_bounds = array<i64: 1, 32>}, {transform_indices = @transform_4, window_bounds = array<i64: 1>}, {transform_indices = @transform_5, window_bounds = array<i64: 8, 1>}]} {
    %c0_i32 = arith.constant 0 : i32
    %0 = arith.cmpi eq, %arg1, %c0_i32 : i32
    %1 = arith.extui %0 : i1 to i32
    %c0_i32_0 = arith.constant 0 : i32
    %2 = arith.cmpi ne, %1, %c0_i32_0 : i32
    scf.if %2 {
      %cst_15 = arith.constant 0.000000e+00 : f32
      %20 = vector.broadcast %cst_15 : f32 to vector<8x32xf32>
      %c0_16 = arith.constant 0 : index
      %c0_17 = arith.constant 0 : index
      %21 = vector.load %arg8[%c0_16, %c0_17] : memref<8x32xf32, #tpu.memory_space<vmem>>, vector<8x32xf32>
      tpu.vector_store %arg8[%c0_16, %c0_17], %20 {strides = array<i32>} : memref<8x32xf32, #tpu.memory_space<vmem>>, vector<8x32xf32>,
    } else {
    }
    %c0 = arith.constant 0 : index
    %c0_1 = arith.constant 0 : index
    %3 = vector.load %arg2[%c0, %c0_1] : memref<8x32xf32, #tpu.memory_space<vmem>>, vector<8x32xf32>
    %c0_2 = arith.constant 0 : index
    %c0_3 = arith.constant 0 : index
    %4 = vector.load %arg3[%c0_2, %c0_3] : memref<32x32xf32, #tpu.memory_space<vmem>>, vector<32x32xf32>
    %cst = arith.constant dense<0.000000e+00> : vector<8x32xf32>
    %5 = tpu.matmul %3, %4, %cst {dimension_numbers = #tpu.dot_dimension_numbers<[1], [0], [0], [1], [0, 0, 1, 1], [], []>} : vector<8x32xf32>, vector<32x32xf32>, vector<8x32xf32> -> vector<8x32xf32>
    %c0_4 = arith.constant 0 : index
    %c0_5 = arith.constant 0 : index
    %6 = vector.load %arg4[%c0_4, %c0_5] : memref<1x32xf32, #tpu.memory_space<vmem>>, vector<1x32xf32>
    %7 = vector.broadcast %6 : vector<1x32xf32> to vector<8x32xf32>
    %8 = arith.addf %5, %7 : vector<8x32xf32>
    %cst_6 = arith.constant 0.000000e+00 : f32
    %9 = vector.broadcast %cst_6 : f32 to vector<8x32xf32>
    %10 = arith.maximumf %8, %9 : vector<8x32xf32>
    %c0_7 = arith.constant 0 : index
    %c0_8 = arith.constant 0 : index
    %11 = vector.load %arg5[%c0_7, %c0_8] : memref<1x32xf32, #tpu.memory_space<vmem>>, vector<1x32xf32>
    %12 = vector.broadcast %11 : vector<1x32xf32> to vector<8x32xf32>
    %13 = arith.mulf %10, %12 : vector<8x32xf32>
    %c0_9 = arith.constant 0 : index
    %c0_10 = arith.constant 0 : index
    %14 = vector.load %arg8[%c0_9, %c0_10] : memref<8x32xf32, #tpu.memory_space<vmem>>, vector<8x32xf32>
    %15 = arith.addf %14, %13 : vector<8x32xf32>
    %c0_11 = arith.constant 0 : index
    %c0_12 = arith.constant 0 : index
    %16 = vector.load %arg8[%c0_11, %c0_12] : memref<8x32xf32, #tpu.memory_space<vmem>>, vector<8x32xf32>
    tpu.vector_store %arg8[%c0_11, %c0_12], %15 {strides = array<i32>} : memref<8x32xf32, #tpu.memory_space<vmem>>, vector<8x32xf32>,
    %c0_i32_13 = arith.constant 0 : i32
    %17 = arith.cmpi eq, %arg1, %c0_i32_13 : i32
    %18 = arith.extui %17 : i1 to i32
    %c0_i32_14 = arith.constant 0 : i32
    %19 = arith.cmpi ne, %18, %c0_i32_14 : i32
    scf.if %19 {
      %c0_15 = arith.constant 0 : index
      %c0_16 = arith.constant 0 : index
      %20 = vector.load %arg8[%c0_15, %c0_16] : memref<8x32xf32, #tpu.memory_space<vmem>>, vector<8x32xf32>
      %cst_17 = arith.constant dense<0.000000e+00> : vector<8xf32>
      %21 = vector.multi_reduction <add>, %20, %cst_17 [1] : vector<8x32xf32> to vector<8xf32>
      %22 = vector.shape_cast %21 : vector<8xf32> to vector<8x1xf32>
      %c0_18 = arith.constant 0 : index
      %23 = memref.load %arg6[%c0_18] : memref<1xf32, #tpu.memory_space<smem>>
      %24 = vector.broadcast %23 : f32 to vector<8x1xf32>
      %25 = arith.addf %22, %24 : vector<8x1xf32>
      %c0_19 = arith.constant 0 : index
      %c0_20 = arith.constant 0 : index
      %26 = vector.load %arg7[%c0_19, %c0_20] : memref<8x1xf32, #tpu.memory_space<vmem>>, vector<8x1xf32>
      tpu.vector_store %arg7[%c0_19, %c0_20], %25 {strides = array<i32>} : memref<8x1xf32, #tpu.memory_space<vmem>>, vector<8x1xf32>,
    } else {
    }
    return
  }
  func.func @transform_0(%arg0: i32, %arg1: i32) -> (i32, i32) {
    %c0_i32 = arith.constant 0 : i32
    %c0_i32_0 = arith.constant 0 : i32
    return %arg0, %c0_i32 : i32, i32
  }
  func.func @transform_1(%arg0: i32, %arg1: i32) -> (i32, i32) {
    %c0_i32 = arith.constant 0 : i32
    %c0_i32_0 = arith.constant 0 : i32
    return %c0_i32, %arg1 : i32, i32
  }
  func.func @transform_2(%arg0: i32, %arg1: i32) -> (i32, i32) {
    %c0_i32 = arith.constant 0 : i32
    %c0_i32_0 = arith.constant 0 : i32
    return %c0_i32, %arg1 : i32, i32
  }
  func.func @transform_3(%arg0: i32, %arg1: i32) -> (i32, i32) {
    %c0_i32 = arith.constant 0 : i32
    %c0_i32_0 = arith.constant 0 : i32
    return %c0_i32, %arg1 : i32, i32
  }
  func.func @transform_4(%arg0: i32, %arg1: i32) -> i32 {
    %c0_i32 = arith.constant 0 : i32
    %c0_i32_0 = arith.constant 0 : i32
    return %c0_i32 : i32
  }
  func.func @transform_5(%arg0: i32, %arg1: i32) -> (i32, i32) {
    %c0_i32 = arith.constant 0 : i32
    %c0_i32_0 = arith.constant 0 : i32
    return %arg0, %c0_i32 : i32, i32
  }
}

</mosaic_0001>

<bundles_post_ra>
// kernel: tpu_custom_call.1
= control target key start
LH: loop header
LB: loop body
LE: loop exit
PB: predicated region body
PF: predicated region fallthrough
CT: control target
= control target key end

     0   :  { %11 = vsyncpa [#allocation5], 0  ;;  %s333_s0 = inlined_call_operand.hbm [shape: f32[8,32], index: 0, kind: input, shape index: {}]   ;;  %s334_s1 = inlined_call_operand.hbm [shape: f32[32,32], index: 1, kind: input, shape index: {}]   ;;  %s335_s2 = inlined_call_operand.vmem [shape: f32[1,32], index: 2, kind: input, shape index: {}]   ;;  %s336_s3 = inlined_call_operand.vmem [shape: f32[1,32], index: 3, kind: input, shape index: {}]   ;;  %s337_s4 = inlined_call_operand.<no memory space> [shape: f32[1], index: 4, kind: input, shape index: {}]   ;;  %s338_s5 = inlined_call_operand.vmem [shape: f32[8,1], index: 5, kind: output, shape index: {}]  }
   0x1   :  { %12 = vsyncpa [#allocation7], 0  ;;  %s249_s18 = smov [#allocation4]   ;;  %s250_s20 = smov [#allocation6]  }
   0x2   :  { %s19_s19 = sshll.u32 %s249_s18, 4  ;;  %s28_s21 = sshll.u32 %s250_s20, 4  ;;  %s20_s19 = int_to_ptr.vmem [resolvable:$true] %s19_s19  ;;  %s286_s21 = int_to_ptr.vmem [resolvable:$true] %s28_s21 }
   0x3   :  { %s201_s24 = scalar_lea.hbm %s333_s0, 128 }
   0x4   :  { %p202_p0 = scmp.ne.s32.totalorder %s333_s0, %s201_s24  ;;  %p205_p1 = scmp.lt.u32.totalorder %s201_s24, %s333_s0 }
   0x6   :  { %p207_p2 = pnand %p205_p1, %p202_p0 }
   0x8   :  { %210 = shalt.err (!%p207_p2)
}
   0x9   :  { %s211_s29 = scalar_lea.vmem %s20_s19, 128  ;;  %p216_p4 = scmp.lt.s32.totalorder %s20_s19, %s20_s19 }
   0xa   :  { %p212_p3 = scmp.ne.s32.totalorder %s20_s19, %s211_s29  ;;  %p217_p5 = scmp.lt.s32.totalorder %s211_s29, %s211_s29 }
   0xc   :  { %p218_p6 = por %p217_p5, %p216_p4 }
   0xe   :  { %p219_p7 = pnand %p218_p6, %p212_p3 }
  0x10   :  { %222 = shalt.err (!%p219_p7)
}
  0x11   :  { %22 = dma.hbm_to_vmem [thread:$0]  %s333_s0, 128, %s20_s19, [#allocation5]  }
  0x12   :  { %s223_s9 = scalar_lea.hbm %s334_s1, 512 }
  0x13   :  { %p224_p8 = scmp.ne.s32.totalorder %s334_s1, %s223_s9  ;;  %p227_p9 = scmp.lt.u32.totalorder %s223_s9, %s334_s1 }
  0x15   :  { %p229_p10 = pnand %p227_p9, %p224_p8 }
  0x17   :  { %232 = shalt.err (!%p229_p10)
}
  0x18   :  { %s233_s14 = scalar_lea.vmem %s286_s21, 512  ;;  %p238_p12 = scmp.lt.s32.totalorder %s286_s21, %s286_s21 }
  0x19   :  { %p234_p11 = scmp.ne.s32.totalorder %s286_s21, %s233_s14  ;;  %p239_p13 = scmp.lt.s32.totalorder %s233_s14, %s233_s14 }
  0x1b   :  { %p240_p0 = por %p239_p13, %p238_p12 }
  0x1d   :  { %p241_p1 = pnand %p240_p0, %p234_p11 }
  0x1f   :  { %244 = shalt.err (!%p241_p1)
}
  0x20   :  { %s251_s0 = smov 128   ;;  %s252_s15 = smov 8  }
  0x21   :  { %34 = dma.hbm_to_vmem [thread:$0]  %s334_s1, 512, %s286_s21, [#allocation7], %s251_s0, %s251_s0, %s252_s15  }
  0x22   :  { %245 = dma.done.wait [#allocation5], 128  }
  0x23   :  { %246 = vsyncadd [#allocation5], 4294967168 }
  0x24   :  { %247 = dma.done.wait [#allocation7], 512  }
  0x25   :  { %248 = vsyncadd [#allocation7], 4294966784  ;;  %vm51_vm0 = vcmask 261120   ;;  %v253_v0 = vmov 0.0|0.0   ;;  %v254_v1 = vmov 0.0   ;;  %vm255_vm1 = vmmov 0  }
  0x26   :  { %188 = vmatprep.subr.bf16.mxu0 %v253_v0  ;;  %52 = vst.msk [vmem:[#allocation2] sm:$0xff] %vm51_vm0, %v254_v1  ;;  %185 = vmatprep.mubr.msk.f32.mxu0 %vm255_vm1, %v254_v1  ;;  %v54_v2 = vld [vmem:[#allocation6] sm:$0xff]  ;;  %v55_v3 = vld [vmem:[#allocation6 + $0x8] sm:$0xff]  ;;  %v56_v4 = vld [vmem:[#allocation6 + $0x10] sm:$0xff]  ;;  %v159_v20 = vstv %s337_s4  ;;  %vm161_vm2 = vcmask 7168  }
  0x27   :  { %v189_v5 = vpack.c.bf16 %v55_v3, %v54_v2  ;;  %v57_v6 = vld [vmem:[#allocation6 + $0x18] sm:$0xff]  ;;  %v169_v9 = vld [vmem:[%s335_s2] ss:$0 sm:$0xff] }
  0x28   :  { %v192_v7 = vpack.c.bf16 %v57_v6, %v56_v4  ;;  %v53_v8 = vld [vmem:[#allocation4] sm:$0xff]  ;;  %v171_v13 = vld [vmem:[%s336_s3] ss:$0 sm:$0xff] }
  0x29   :  { %190 = vmatpush3.bf16.msra.mxu0 %v189_v5 }
  0x2a   :  { %191 = vmatprep.subr.bf16.mxu0 %v253_v0 }
  0x2d   :  { %193 = vmatpush3.bf16.msra.mxu0 %v192_v7  ;;  %v148_v15 = vld [vmem:[#allocation2] sm:$0xff] }
  0x30   :  { %186 = vmatmul.mubr.msk.f32.vlgmr.msra.gmra.mrb[0].mxu0 %vm51_vm0, %v53_v8 }
 0x103   :  { %v135_v10 = vpop.f32.mrb[0].mxu0 }
 0x104   :  { %v136_v11 = vadd.f32 %v169_v9, %v135_v10  ;;  %v187_v12 = vpop.f32.mrb[1].mxu0 }
 0x106   :  { %v139_v14 = vmax.f32 %v136_v11, 0.0 }
 0x108   :  { %v147_v16 = vmul.f32 %v171_v13, %v139_v14 }
 0x10a   :  { %v149_v17 = vadd.f32 %v148_v15, %v147_v16 }
 0x10c   :  { %150 = vst.msk [vmem:[#allocation2] sm:$0xff] %vm51_vm0, %v149_v17 }
 0x113   :  { %v154_v18 = vld [vmem:[#allocation2] sm:$0xff] }
 0x114   :  { %v155_v19 = vsel %vm51_vm0, %v154_v18, 0.0 }
 0x115   :  { %156 = vadd.xlane.f32.xlu0 %v155_v19 }
 0x1a2   :  { %v157_v21 = vpop.xlane.xlu0 %156 }
 0x1a3   :  { %v160_v22 = vadd.f32 %v159_v20, %v157_v21 }
 0x1a5   :  { %162 = vst.msk [vmem:[%s338_s5] sm:$0xff] %vm161_vm2, %v160_v22 }
 0x1a6   :  { %167 = vsyncpa [#allocation5], 1 }
 0x1a7   :  { %168 = vsyncpa [#allocation7], 1 }

</bundles_post_ra>
